<compile_context>
chip_gen: v5e
topology: v5e:2x2
jax: 0.10.0
libtpu: 0.0.40
codegen_flags: <defaults>
</compile_context>

<pallas_src>
import math

import jax
import jax.numpy as jnp
from jax.experimental import pallas as pl
from jax.experimental.pallas import tpu as pltpu


def _square_kernel(x_ref, o_ref):
    x = x_ref[...]
    o_ref[...] = x * x


def _round_up(a: int, b: int) -> int:
    return ((a + b - 1) // b) * b


def square(x: jax.Array) -> jax.Array:
    """Elementwise square via a Pallas TPU kernel. Preserves shape & dtype."""
    orig_shape = x.shape
    dtype = x.dtype
    total = max(1, math.prod(orig_shape))

    itemsize = jnp.dtype(dtype).itemsize
    sub = max(8, 32 // itemsize)      # sublane pack: 8 (f32), 16 (bf16), 32 (i8)
    LANE = 128
    N_TARGET = 2048                   # lane-dense slab width (multiple of 128)

    # Lane-dense 2D layout: last dim is a large multiple of 128.
    N = min(N_TARGET, max(LANE, _round_up(pl.cdiv(total, sub), LANE)))
    M = pl.cdiv(total, N)

    # Tile: full lane width, ~2 MiB per buffer, rounded to the sublane pack.
    tile_bytes = 2 * 1024 * 1024
    tm = max(sub, (tile_bytes // (N * itemsize)) // sub * sub)
    if M <= tm:
        # Single row-block: align to the sublane pack unless M is tiny
        # (a full-extent block is always legal).
        tm = _round_up(M, sub) if M >= sub else M
    M_pad = _round_up(M, tm)          # no partial trailing blocks

    padded_total = M_pad * N
    flat = x.reshape(-1)
    if padded_total != total:
        flat = jnp.pad(flat, (0, padded_total - total))
    x2d = flat.reshape(M_pad, N)

    grid = (M_pad // tm,)

    out2d = pl.pallas_call(
        _square_kernel,
        out_shape=jax.ShapeDtypeStruct((M_pad, N), dtype),
        grid=grid,
        in_specs=[pl.BlockSpec((tm, N), lambda i: (i, 0))],
        out_specs=pl.BlockSpec((tm, N), lambda i: (i, 0)),
        compiler_params=pltpu.CompilerParams(
            dimension_semantics=("parallel",),
        ),
    )(x2d)

    out = out2d.reshape(-1)
    if padded_total != total:
        out = out[:total]
    return out.reshape(orig_shape)


if __name__ == "__main__":
    key = jax.random.PRNGKey(0)
    # Small NCHW-like input consistent with a typical conv-net feature map.
    x = jax.random.normal(key, (2, 4, 16, 16), dtype=jnp.float32)

    y = square(x)
    y = jax.block_until_ready(y)

    # Correctness check against plain JAX reference.
    ref = x ** 2
    assert y.shape == x.shape and y.dtype == x.dtype
    assert jnp.allclose(y, ref, atol=0, rtol=0), "mismatch vs reference"

    # Also exercise an awkward (non-multiple-of-128) shape and bf16 packing.
    x2 = jax.random.normal(key, (3, 5, 7), dtype=jnp.bfloat16)
    y2 = jax.block_until_ready(square(x2))
    assert y2.shape == x2.shape and y2.dtype == x2.dtype
    assert jnp.allclose(y2.astype(jnp.float32), (x2 * x2).astype(jnp.float32))

    print("KERNEL_OK")
</pallas_src>

<mosaic_0001>
module attributes {stable_mosaic.version = 11 : i64} {
  func.func @_square_kernel(%arg0: i32, %arg1: memref<8x256xf32, #tpu.memory_space<vmem>>, %arg2: memref<8x256xf32, #tpu.memory_space<vmem>>) attributes {dimension_semantics = [#tpu.dimension_semantics<parallel>], iteration_bounds = array<i64: 1>, scalar_prefetch = 0 : i64, scratch_operands = 0 : i64, tpu.core_type = #tpu.core_type<tc>, window_params = [{transform_indices = @transform_0, window_bounds = array<i64: 8, 256>}, {transform_indices = @transform_1, window_bounds = array<i64: 8, 256>}]} {
    %c0 = arith.constant 0 : index
    %c0_0 = arith.constant 0 : index
    %0 = vector.load %arg1[%c0, %c0_0] : memref<8x256xf32, #tpu.memory_space<vmem>>, vector<8x256xf32>
    %1 = arith.mulf %0, %0 : vector<8x256xf32>
    %c0_1 = arith.constant 0 : index
    %c0_2 = arith.constant 0 : index
    %2 = vector.load %arg2[%c0_1, %c0_2] : memref<8x256xf32, #tpu.memory_space<vmem>>, vector<8x256xf32>
    tpu.vector_store %arg2[%c0_1, %c0_2], %1 {strides = array<i32>} : memref<8x256xf32, #tpu.memory_space<vmem>>, vector<8x256xf32>,
    return
  }
  func.func @transform_0(%arg0: i32) -> (i32, i32) {
    %c0_i32 = arith.constant 0 : i32
    %c0_i32_0 = arith.constant 0 : i32
    return %arg0, %c0_i32 : i32, i32
  }
  func.func @transform_1(%arg0: i32) -> (i32, i32) {
    %c0_i32 = arith.constant 0 : i32
    %c0_i32_0 = arith.constant 0 : i32
    return %arg0, %c0_i32 : i32, i32
  }
}

</mosaic_0001>

<bundles_post_ra>
// kernel: tpu_custom_call.1
= control target key start
LH: loop header
LB: loop body
LE: loop exit
PB: predicated region body
PF: predicated region fallthrough
CT: control target
= control target key end

     0   :  { %6 = vsyncpa [#allocation3], 0  ;;  %s118_s0 = inlined_call_operand.hbm [shape: f32[8,256], index: 0, kind: input, shape index: {}]   ;;  %s119_s1 = inlined_call_operand.hbm [shape: f32[8,256], index: 1, kind: output, shape index: {}]  }
   0x1   :  { %7 = vsyncpa [#allocation4], 0  ;;  %s13_s8 = sshll.u32 %s118_s0, 4  ;;  %s100_s9 = smov [#allocation2]   ;;  %s14_s8 = int_to_ptr.hbm [resolvable:$true] %s13_s8 }
   0x2   :  { %s15_s10 = sshll.u32 %s100_s9, 4  ;;  %s16_s10 = int_to_ptr.vmem [resolvable:$true] %s15_s10 }
   0x3   :  { %18 = dma.hbm_to_vmem [thread:$0]  %s14_s8, 256, %s16_s10, [#allocation3]  }
   0x4   :  { %96 = dma.done.wait [#allocation3], 256  }
   0x5   :  { %97 = vsyncadd [#allocation3], 4294967040  ;;  %s101_s11 = smov [#allocation5]   ;;  %s36_s15 = sshll.u32 %s119_s1, 4  ;;  %v23_v0 = vld [vmem:[#allocation2] sm:$0xff]  ;;  %v24_v1 = vld [vmem:[#allocation2 + $0x8] sm:$0xff]  ;;  %s37_s15 = int_to_ptr.hbm [resolvable:$true] %s36_s15 }
   0x6   :  { %s34_s12 = sshll.u32 %s101_s11, 4  ;;  %v25_v2 = vmul.f32 %v23_v0, %v23_v0  ;;  %v26_v3 = vmul.f32 %v24_v1, %v24_v1  ;;  %s35_s12 = int_to_ptr.vmem [resolvable:$true] %s34_s12 }
   0x8   :  { %27 = vst [vmem:[#allocation5] sm:$0xff] %v25_v2 }
   0x9   :  { %28 = vst [vmem:[#allocation5 + $0x8] sm:$0xff] %v26_v3 }
   0xa   :  { %39 = dma.vmem_to_hbm [thread:$0]  %s35_s12, 256, %s37_s15, [#allocation4]  }
   0xb   :  { %98 = dma.done.wait [#allocation4], 256  }
   0xc   :  { %99 = vsyncadd [#allocation4], 4294967040 }
   0xd   :  { %44 = vsyncpa [#allocation3], 1 }
   0xe   :  { %45 = vsyncpa [#allocation4], 1 }

</bundles_post_ra>
